<compile_context>
chip_gen: v7x
topology: tpu7x:2x2x1
jax: 0.10.0
libtpu: 0.0.40
codegen_flags: <defaults>
</compile_context>

<pallas_src>
import jax
import jax.numpy as jnp
from jax.experimental import pallas as pl
from jax.experimental.pallas import tpu as pltpu


def mlp_kernel(p_ref, x_ref, o_ref):
    """p_ref: SMEM f32[13] = [w1_00,w1_01, w1_10,w1_11, w1_20,w1_21,
                              b1_0,b1_1,b1_2, w2_0,w2_1,w2_2, b2]
       x_ref: VMEM (2, TB_ROWS, 128)   (batch dense on sublanes x lanes)
       o_ref: VMEM (TB_ROWS, 128)
    """
    x0 = x_ref[0]                      # (TB_ROWS, 128)
    x1 = x_ref[1]                      # (TB_ROWS, 128)

    # Hoist all 13 scalar reads once (single sld each), no repeated SMEM reads.
    p = [p_ref[i] for i in range(13)]

    # Accumulator starts directly as the broadcast output bias (no extra add).
    acc = jnp.full(x0.shape, p[12], dtype=x0.dtype)

    # 3 hidden units, statically unrolled -> pure VPU mul/add/max.
    for j in range(3):
        h = jnp.maximum(x0 * p[2 * j] + x1 * p[2 * j + 1] + p[6 + j], 0.0)
        acc = acc + h * p[9 + j]

    o_ref[...] = acc


def _round_up(a, b):
    return (a + b - 1) // b * b


def _max_tb_rows():
    """Largest row-tile whose double-buffered in+out footprint stays well under
    the per-generation VMEM budget (and under the 32 MiB default scoped limit).
    Bytes per row: in 2*128*4 = 1024, out 128*4 = 512 -> 3072 B/row double-buffered."""
    try:
        vmem_bytes = pltpu.get_tpu_info().vmem_capacity_bytes
    except Exception:
        vmem_bytes = 64 << 20  # conservative (v7x physical)
    budget = min(vmem_bytes // 5, 20 << 20)     # <=20 MiB double-buffered
    return max(8, (budget // 3072) // 8 * 8)


def _pack_params(W1, b1, W2, b2):
    return jnp.concatenate(
        [W1.reshape(-1), b1.reshape(-1), W2.reshape(-1), b2.reshape(-1)]
    ).astype(jnp.float32)  # (13,)


def net_forward_feature_major(x_fm, params):
    """x_fm: (2, B_pad) f32 feature-major, B_pad a multiple of 1024.
    Returns (B_pad,) f32. Pure-kernel path, no wrapper relayouts."""
    two, b_pad = x_fm.shape
    assert two == 2 and b_pad % 1024 == 0
    rows = b_pad // 128

    max_rows = _max_tb_rows()
    if rows >= 16:
        # >=2 (even) parallel steps so both v7x TensorCores get work.
        num_steps = _round_up(max(2, pl.cdiv(rows, max_rows)), 2)
        tb_rows = _round_up(pl.cdiv(rows, num_steps), 8)
    else:
        num_steps = 1
        tb_rows = rows
    rows_pad = tb_rows * num_steps
    if rows_pad != rows:
        x_fm = jnp.pad(x_fm, ((0, 0), (0, (rows_pad - rows) * 128)))

    x3 = x_fm.reshape(2, rows_pad, 128)   # free reshape (row-major view)

    out = pl.pallas_call(
        mlp_kernel,
        out_shape=jax.ShapeDtypeStruct((rows_pad, 128), jnp.float32),
        grid=(num_steps,),
        in_specs=[
            pl.BlockSpec(memory_space=pltpu.MemorySpace.SMEM),          # params
            pl.BlockSpec((2, tb_rows, 128), lambda i: (0, i, 0)),       # x tile
        ],
        out_specs=pl.BlockSpec((tb_rows, 128), lambda i: (i, 0)),
        compiler_params=pltpu.CompilerParams(
            dimension_semantics=("parallel",),
        ),
    )(params, x3)

    return out.reshape(-1)[:b_pad]


def net_forward(x, W1, b1, W2, b2):
    """PyTorch-layout entry point. x: (B, 2) f32. W1: (3,2), b1: (3,),
    W2: (1,3), b2: (1,). Returns (B, 1) f32 == Linear(2,3)+ReLU -> Linear(3,1)."""
    B = x.shape[0]
    params = _pack_params(W1, b1, W2, b2)

    b_pad = _round_up(max(B, 1), 1024)          # whole (8,128) row-tiles
    if b_pad != B:
        x = jnp.pad(x, ((0, b_pad - B), (0, 0)))

    # Single relayout pass to deinterleave features (see TODO above).
    x_fm = x.T                                   # (2, B_pad)

    y = net_forward_feature_major(x_fm, params)  # (>=B_pad,)
    # (rows,128) row-major == batch order -> free reshape, then drop padding.
    return y[:B].reshape(B, 1)


if __name__ == "__main__":
    key = jax.random.PRNGKey(0)
    k1, k2, k3, k4, kx1, kx2, kx3 = jax.random.split(key, 7)

    # PyTorch-style init: hidden Linear(2,3), output Linear(3,1).
    bound1 = 1.0 / jnp.sqrt(2.0)
    bound2 = 1.0 / jnp.sqrt(3.0)
    W1 = jax.random.uniform(k1, (3, 2), jnp.float32, -bound1, bound1)
    b1 = jax.random.uniform(k2, (3,), jnp.float32, -bound1, bound1)
    W2 = jax.random.uniform(k3, (1, 3), jnp.float32, -bound2, bound2)
    b2 = jax.random.uniform(k4, (1,), jnp.float32, -bound2, bound2)

    def ref_fn(xs):
        return jnp.maximum(xs @ W1.T + b1, 0.0) @ W2.T + b2

    # --- Tiny batch (single-step path, heavy padding) ---
    x_small = jax.random.normal(kx1, (8, 2), jnp.float32)
    out_small = jax.block_until_ready(net_forward(x_small, W1, b1, W2, b2))
    assert out_small.shape == (8, 1)
    assert jnp.allclose(out_small, ref_fn(x_small), atol=1e-5), "mismatch B=8"

    # --- Non-multiple-of-128 batch (pad path) ---
    x_odd = jax.random.normal(kx2, (1000, 2), jnp.float32)
    out_odd = jax.block_until_ready(net_forward(x_odd, W1, b1, W2, b2))
    assert out_odd.shape == (1000, 1)
    assert jnp.allclose(out_odd, ref_fn(x_odd), atol=1e-5), "mismatch B=1000"

    # --- Larger batch exercising the multi-step parallel grid ---
    x_big = jax.random.normal(kx3, (8192, 2), jnp.float32)
    out_big = jax.block_until_ready(net_forward(x_big, W1, b1, W2, b2))
    assert out_big.shape == (8192, 1)
    assert jnp.allclose(out_big, ref_fn(x_big), atol=1e-5), "mismatch B=8192"

    print("KERNEL_OK")
</pallas_src>

<mosaic_0001>
module attributes {stable_mosaic.version = 11 : i64} {
  func.func @mlp_kernel(%arg0: i32, %arg1: memref<13xf32, #tpu.memory_space<smem>>, %arg2: memref<2x8x128xf32, #tpu.memory_space<vmem>>, %arg3: memref<8x128xf32, #tpu.memory_space<vmem>>) attributes {dimension_semantics = [#tpu.dimension_semantics<parallel>], iteration_bounds = array<i64: 1>, scalar_prefetch = 0 : i64, scratch_operands = 0 : i64, tpu.core_type = #tpu.core_type<tc>, window_params = [{transform_indices = @transform_0, window_bounds = array<i64: 13>}, {transform_indices = @transform_1, window_bounds = array<i64: 2, 8, 128>}, {transform_indices = @transform_2, window_bounds = array<i64: 8, 128>}]} {
    %c0 = arith.constant 0 : index
    %c0_0 = arith.constant 0 : index
    %c0_1 = arith.constant 0 : index
    %0 = vector.load %arg2[%c0, %c0_0, %c0_1] : memref<2x8x128xf32, #tpu.memory_space<vmem>>, vector<1x8x128xf32>
    %1 = vector.shape_cast %0 : vector<1x8x128xf32> to vector<8x128xf32>
    %c1 = arith.constant 1 : index
    %c0_2 = arith.constant 0 : index
    %c0_3 = arith.constant 0 : index
    %2 = vector.load %arg2[%c1, %c0_2, %c0_3] : memref<2x8x128xf32, #tpu.memory_space<vmem>>, vector<1x8x128xf32>
    %3 = vector.shape_cast %2 : vector<1x8x128xf32> to vector<8x128xf32>
    %c0_4 = arith.constant 0 : index
    %4 = memref.load %arg1[%c0_4] : memref<13xf32, #tpu.memory_space<smem>>
    %c1_5 = arith.constant 1 : index
    %5 = memref.load %arg1[%c1_5] : memref<13xf32, #tpu.memory_space<smem>>
    %c2 = arith.constant 2 : index
    %6 = memref.load %arg1[%c2] : memref<13xf32, #tpu.memory_space<smem>>
    %c3 = arith.constant 3 : index
    %7 = memref.load %arg1[%c3] : memref<13xf32, #tpu.memory_space<smem>>
    %c4 = arith.constant 4 : index
    %8 = memref.load %arg1[%c4] : memref<13xf32, #tpu.memory_space<smem>>
    %c5 = arith.constant 5 : index
    %9 = memref.load %arg1[%c5] : memref<13xf32, #tpu.memory_space<smem>>
    %c6 = arith.constant 6 : index
    %10 = memref.load %arg1[%c6] : memref<13xf32, #tpu.memory_space<smem>>
    %c7 = arith.constant 7 : index
    %11 = memref.load %arg1[%c7] : memref<13xf32, #tpu.memory_space<smem>>
    %c8 = arith.constant 8 : index
    %12 = memref.load %arg1[%c8] : memref<13xf32, #tpu.memory_space<smem>>
    %c9 = arith.constant 9 : index
    %13 = memref.load %arg1[%c9] : memref<13xf32, #tpu.memory_space<smem>>
    %c10 = arith.constant 10 : index
    %14 = memref.load %arg1[%c10] : memref<13xf32, #tpu.memory_space<smem>>
    %c11 = arith.constant 11 : index
    %15 = memref.load %arg1[%c11] : memref<13xf32, #tpu.memory_space<smem>>
    %c12 = arith.constant 12 : index
    %16 = memref.load %arg1[%c12] : memref<13xf32, #tpu.memory_space<smem>>
    %17 = vector.broadcast %16 : f32 to vector<8x128xf32>
    %18 = vector.broadcast %4 : f32 to vector<8x128xf32>
    %19 = arith.mulf %1, %18 : vector<8x128xf32>
    %20 = vector.broadcast %5 : f32 to vector<8x128xf32>
    %21 = arith.mulf %3, %20 : vector<8x128xf32>
    %22 = arith.addf %19, %21 : vector<8x128xf32>
    %23 = vector.broadcast %10 : f32 to vector<8x128xf32>
    %24 = arith.addf %22, %23 : vector<8x128xf32>
    %cst = arith.constant 0.000000e+00 : f32
    %25 = vector.broadcast %cst : f32 to vector<8x128xf32>
    %26 = arith.maximumf %24, %25 : vector<8x128xf32>
    %27 = vector.broadcast %13 : f32 to vector<8x128xf32>
    %28 = arith.mulf %26, %27 : vector<8x128xf32>
    %29 = arith.addf %17, %28 : vector<8x128xf32>
    %30 = vector.broadcast %6 : f32 to vector<8x128xf32>
    %31 = arith.mulf %1, %30 : vector<8x128xf32>
    %32 = vector.broadcast %7 : f32 to vector<8x128xf32>
    %33 = arith.mulf %3, %32 : vector<8x128xf32>
    %34 = arith.addf %31, %33 : vector<8x128xf32>
    %35 = vector.broadcast %11 : f32 to vector<8x128xf32>
    %36 = arith.addf %34, %35 : vector<8x128xf32>
    %cst_6 = arith.constant 0.000000e+00 : f32
    %37 = vector.broadcast %cst_6 : f32 to vector<8x128xf32>
    %38 = arith.maximumf %36, %37 : vector<8x128xf32>
    %39 = vector.broadcast %14 : f32 to vector<8x128xf32>
    %40 = arith.mulf %38, %39 : vector<8x128xf32>
    %41 = arith.addf %29, %40 : vector<8x128xf32>
    %42 = vector.broadcast %8 : f32 to vector<8x128xf32>
    %43 = arith.mulf %1, %42 : vector<8x128xf32>
    %44 = vector.broadcast %9 : f32 to vector<8x128xf32>
    %45 = arith.mulf %3, %44 : vector<8x128xf32>
    %46 = arith.addf %43, %45 : vector<8x128xf32>
    %47 = vector.broadcast %12 : f32 to vector<8x128xf32>
    %48 = arith.addf %46, %47 : vector<8x128xf32>
    %cst_7 = arith.constant 0.000000e+00 : f32
    %49 = vector.broadcast %cst_7 : f32 to vector<8x128xf32>
    %50 = arith.maximumf %48, %49 : vector<8x128xf32>
    %51 = vector.broadcast %15 : f32 to vector<8x128xf32>
    %52 = arith.mulf %50, %51 : vector<8x128xf32>
    %53 = arith.addf %41, %52 : vector<8x128xf32>
    %c0_8 = arith.constant 0 : index
    %c0_9 = arith.constant 0 : index
    %54 = vector.load %arg3[%c0_8, %c0_9] : memref<8x128xf32, #tpu.memory_space<vmem>>, vector<8x128xf32>
    tpu.vector_store %arg3[%c0_8, %c0_9], %53 {strides = array<i32>} : memref<8x128xf32, #tpu.memory_space<vmem>>, vector<8x128xf32>,
    return
  }
  func.func @transform_0(%arg0: i32) -> i32 {
    %c0_i32 = arith.constant 0 : i32
    %c0_i32_0 = arith.constant 0 : i32
    return %c0_i32 : i32
  }
  func.func @transform_1(%arg0: i32) -> (i32, i32, i32) {
    %c0_i32 = arith.constant 0 : i32
    %c0_i32_0 = arith.constant 0 : i32
    %c0_i32_1 = arith.constant 0 : i32
    return %c0_i32, %arg0, %c0_i32_0 : i32, i32, i32
  }
  func.func @transform_2(%arg0: i32) -> (i32, i32) {
    %c0_i32 = arith.constant 0 : i32
    %c0_i32_0 = arith.constant 0 : i32
    return %arg0, %c0_i32 : i32, i32
  }
}

</mosaic_0001>

<bundles_post_ra>
// kernel: tpu_custom_call.1
= control target key start
LH: loop header
LB: loop body
LE: loop exit
PB: predicated region body
PF: predicated region fallthrough
CT: control target
= control target key end

     0   :  { %7 = vsyncpa [#allocation5], 0  ;;  %s243_s0 = inlined_call_operand.hbm [shape: f32[13], index: 0, kind: input, shape index: {}]   ;;  %s244_s1 = inlined_call_operand.hbm [shape: f32[2,8,128], index: 1, kind: input, shape index: {}]   ;;  %s245_s2 = inlined_call_operand.hbm [shape: f32[8,128], index: 2, kind: output, shape index: {}]  }
   0x1   :  { %8 = vsyncpa [#allocation3], 0 }
   0x2   :  { %9 = vsyncpa [#allocation4], 0  ;;  %s121_s11 = scalar_lea.hbm %s243_s0, 16 }
   0x3   :  { %p122_p0 = scmp.ne.s32.totalorder %s243_s0, %s121_s11  ;;  %p125_p1 = scmp.lt.u32.totalorder %s121_s11, %s243_s0 }
   0x5   :  { %p127_p2 = pnand %p125_p1, %p122_p0 }
   0x7   :  { %130 = shalt.err (!%p127_p2)
}
   0x8   :  { %s181_s16 = smov [#allocation2]   ;;  %s182_s19 = smov [#allocation6]  }
   0x9   :  { %17 = dma.hbm_to_smem %s243_s0, 16, %s181_s16, [#allocation5]  }
   0xa   :  { %s23_s20 = sshll.u32 %s182_s19, 4  ;;  %s131_s23 = scalar_lea.hbm %s244_s1, 256  ;;  %s24_s20 = int_to_ptr.vmem [resolvable:$true] %s23_s20 }
   0xb   :  { %p132_p3 = scmp.ne.s32.totalorder %s244_s1, %s131_s23  ;;  %p135_p4 = scmp.lt.u32.totalorder %s131_s23, %s244_s1 }
   0xd   :  { %p137_p5 = pnand %p135_p4, %p132_p3 }
   0xf   :  { %140 = shalt.err (!%p137_p5)
}
  0x10   :  { %s141_s28 = scalar_lea.vmem %s24_s20, 256  ;;  %p146_p7 = scmp.lt.s32.totalorder %s24_s20, %s24_s20 }
  0x11   :  { %p142_p6 = scmp.ne.s32.totalorder %s24_s20, %s141_s28  ;;  %p147_p8 = scmp.lt.s32.totalorder %s141_s28, %s141_s28 }
  0x13   :  { %p148_p9 = por %p147_p8, %p146_p7 }
  0x15   :  { %p149_p10 = pnand %p148_p9, %p142_p6 }
  0x17   :  { %152 = shalt.err (!%p149_p10)
}
  0x18   :  { %s183_s0 = smov 128   ;;  %s184_s29 = smov 8  }
  0x19   :  { %29 = dma.hbm_to_vmem [thread:$0]  %s244_s1, 256, %s24_s20, [#allocation3], %s183_s0, %s183_s0, %s184_s29  }
  0x1a   :  { %175 = dma.done.wait [#allocation5], 16  }
  0x1b   :  { %176 = vsyncadd [#allocation5], 4294967280 }
  0x1c   :  { %177 = dma.done.wait [#allocation3], 256  }
  0x1d   :  { %178 = vsyncadd [#allocation3], 4294967040 }
  0x1e   :  { %36 = sfence }
  0x1f   :  { %s40_s4 = sld [smem:[#allocation2]]  ;;  %s104_s5 = sld [smem:[#allocation2 + $0x1]]  ;;  %v37_v0 = vld [vmem:[#allocation6] sm:$0xff]  ;;  %v39_v1 = vld [vmem:[#allocation6 + $0x8] sm:$0xff] }
  0x20   :  { %s105_s6 = sld [smem:[#allocation2 + $0x2]]  ;;  %s106_s7 = sld [smem:[#allocation2 + $0x3]] }
  0x21   :  { %s107_s8 = sld [smem:[#allocation2 + $0x4]]  ;;  %s108_s9 = sld [smem:[#allocation2 + $0x5]] }
  0x22   :  { %s109_s10 = sld [smem:[#allocation2 + $0x6]]  ;;  %s110_s11 = sld [smem:[#allocation2 + $0x7]] }
  0x23   :  { %s111_s12 = sld [smem:[#allocation2 + $0x8]]  ;;  %s112_s13 = sld [smem:[#allocation2 + $0x9]] }
  0x24   :  { %s225_s14 = sld [smem:[#allocation2 + $0xa]]  ;;  %s227_s1 = sld [smem:[#allocation2 + $0xc]] }
  0x25   :  { %v54_v2 = vstv %s40_s4  ;;  %v56_v3 = vstv %s104_s5  ;;  %s114_s15 = sld [smem:[#allocation2 + $0xb]]  ;;  %s185_s16 = smov [#allocation7]  }
  0x26   :  { %v55_v4 = vmul.f32 %v54_v2, %v37_v0  ;;  %v57_v5 = vmul.f32 %v56_v3, %v39_v1  ;;  %v65_v6 = vstv %s105_s6  ;;  %v67_v7 = vstv %s106_s7  ;;  %s94_s17 = sshll.u32 %s185_s16, 4  ;;  %s95_s17 = int_to_ptr.vmem [resolvable:$true] %s94_s17 }
  0x27   :  { %v66_v8 = vmul.f32 %v65_v6, %v37_v0  ;;  %v68_v9 = vmul.f32 %v67_v7, %v39_v1  ;;  %v76_v10 = vstv %s107_s8  ;;  %v78_v11 = vstv %s108_s9  ;;  %s153_s18 = scalar_lea.vmem %s95_s17, 128  ;;  %p158_p12 = scmp.lt.s32.totalorder %s95_s17, %s95_s17 }
  0x28   :  { %v58_v12 = vadd.f32 %v57_v5, %v55_v4  ;;  %v59_v13 = vstv %s109_s10  ;;  %v70_v14 = vstv %s110_s11  ;;  %v77_v15 = vmul.f32 %v76_v10, %v37_v0  ;;  %p154_p11 = scmp.ne.s32.totalorder %s95_s17, %s153_s18  ;;  %p159_p13 = scmp.lt.s32.totalorder %s153_s18, %s153_s18 }
  0x29   :  { %v69_v16 = vadd.f32 %v68_v9, %v66_v8  ;;  %v79_v17 = vmul.f32 %v78_v11, %v39_v1  ;;  %v81_v19 = vstv %s111_s12  ;;  %v62_v20 = vstv %s112_s13 }
  0x2a   :  { %v60_v18 = vadd.f32 %v59_v13, %v58_v12  ;;  %v73_v24 = vstv %s225_s14  ;;  %v53_v25 = vstv %s227_s1  ;;  %p160_p0 = por %p159_p13, %p158_p12 }
  0x2b   :  { %v71_v21 = vadd.f32 %v70_v14, %v69_v16  ;;  %v80_v22 = vadd.f32 %v79_v17, %v77_v15  ;;  %v84_v29 = vstv %s114_s15 }
  0x2c   :  { %v61_v23 = vmax.f32 %v60_v18, 0.0  ;;  %p161_p1 = pnand %p160_p0, %p154_p11 }
  0x2d   :  { %v72_v26 = vmax.f32 %v71_v21, 0.0  ;;  %v82_v27 = vadd.f32 %v81_v19, %v80_v22 }
  0x2e   :  { %v63_v28 = vmul.f32 %v62_v20, %v61_v23 }
  0x2f   :  { %v74_v30 = vmul.f32 %v73_v24, %v72_v26  ;;  %v83_v31 = vmax.f32 %v82_v27, 0.0 }
  0x30   :  { %v64_v32 = vadd.f32 %v63_v28, %v53_v25 }
  0x31   :  { %v85_v33 = vmul.f32 %v84_v29, %v83_v31 }
  0x32   :  { %v75_v34 = vadd.f32 %v74_v30, %v64_v32 }
  0x34   :  { %v86_v35 = vadd.f32 %v85_v33, %v75_v34 }
  0x36   :  { %87 = vst [vmem:[#allocation7] sm:$0xff] %v86_v35 }
  0x37   :  { %164 = shalt.err (!%p161_p1)
}
  0x38   :  { %s165_s21 = scalar_lea.hbm %s245_s2, 128 }
  0x39   :  { %p166_p2 = scmp.ne.s32.totalorder %s245_s2, %s165_s21  ;;  %p169_p3 = scmp.lt.u32.totalorder %s165_s21, %s245_s2 }
  0x3b   :  { %p171_p4 = pnand %p169_p3, %p166_p2 }
  0x3d   :  { %174 = shalt.err (!%p171_p4)
}
  0x3e   :  { %97 = dma.vmem_to_hbm [thread:$0]  %s95_s17, 128, %s245_s2, [#allocation4]  }
  0x3f   :  { %179 = dma.done.wait [#allocation4], 128  }
  0x40   :  { %180 = vsyncadd [#allocation4], 4294967168 }
  0x41   :  { %101 = vsyncpa [#allocation3], 1 }
  0x42   :  { %102 = vsyncpa [#allocation4], 1 }
  0x43   :  { %103 = vsyncpa [#allocation5], 1 }

</bundles_post_ra>
